<compile_context>
chip_gen: v5e
topology: v5e:2x2
jax: 0.10.0
libtpu: 0.0.40
codegen_flags: <defaults>
</compile_context>

<pallas_src>
import jax
import jax.numpy as jnp
from jax.experimental import pallas as pl
from jax.experimental.pallas import tpu as pltpu

_LANE = 128


def _round_up(a, m):
    return ((a + m - 1) // m) * m


# ------------------------------- kernel -------------------------------------

def _gru_cell_kernel(x_ref, h_ref, wi_ref, wh_ref, b_ref, out_ref):
    Hp = wh_ref.shape[0]
    # bf16 MXU operands (in-kernel VPU casts, hidden under the MXU),
    # f32 accumulation and a fully f32 epilogue.
    xb = x_ref[...].astype(jnp.bfloat16)
    h = h_ref[...].astype(jnp.float32)
    hb = h.astype(jnp.bfloat16)
    gi = jnp.dot(xb, wi_ref[...],
                 preferred_element_type=jnp.float32) + b_ref[0:1, :]
    gh = jnp.dot(hb, wh_ref[...],
                 preferred_element_type=jnp.float32) + b_ref[1:2, :]
    # Lane-aligned gate slices (Hp is a multiple of 128): [r | z | n]
    r = jax.nn.sigmoid(gi[:, 0:Hp] + gh[:, 0:Hp])
    z = jax.nn.sigmoid(gi[:, Hp:2 * Hp] + gh[:, Hp:2 * Hp])
    n = jnp.tanh(gi[:, 2 * Hp:3 * Hp] + r * gh[:, 2 * Hp:3 * Hp])
    out_ref[...] = (n + z * (h - n)).astype(out_ref.dtype)


# ------------------------------ packing -------------------------------------

def pack_gru_params(w_ih, w_hh, b_ih, b_hh):
    """One-time packing of PyTorch-layout GRUCell params for the kernel.

    w_ih: (3H, I), w_hh: (3H, H), b_ih/b_hh: (3H,) with gate order [r|z|n].
    Returns (w_i (Ip, 3Hp) bf16, w_h (Hp, 3Hp) bf16, b_packed (2, 3Hp) f32, H).
    """
    threeH, I = w_ih.shape
    H = threeH // 3
    Hp = _round_up(H, _LANE)
    Ip = _round_up(I, _LANE)

    def colpad(m):  # pad a gate column block H -> Hp
        return jnp.pad(m, ((0, 0), (0, Hp - H)))

    def gate_cols(w):  # (3H, K) -> (K, 3Hp) with [r | z | n] column blocks
        return jnp.concatenate(
            [colpad(w[0:H].T), colpad(w[H:2 * H].T), colpad(w[2 * H:3 * H].T)],
            axis=1)

    # Zero-padded contraction rows (I->Ip, H->Hp) so padded x/h lanes add 0.
    w_i = jnp.pad(gate_cols(w_ih), ((0, Ip - I), (0, 0))).astype(jnp.bfloat16)
    w_h = jnp.pad(gate_cols(w_hh), ((0, Hp - H), (0, 0))).astype(jnp.bfloat16)

    def vpad(v):
        return jnp.pad(v, (0, Hp - H))

    b_i = jnp.concatenate([
        vpad(b_ih[0:H] + b_hh[0:H]),            # combined r bias
        vpad(b_ih[H:2 * H] + b_hh[H:2 * H]),    # combined z bias
        vpad(b_ih[2 * H:3 * H]),                # b_in
    ])
    b_h = jnp.concatenate([
        jnp.zeros((2 * Hp,), jnp.float32),      # r/z hidden biases folded above
        vpad(b_hh[2 * H:3 * H]),                # b_hn (stays inside the r gate)
    ])
    b_packed = jnp.stack([b_i, b_h]).astype(jnp.float32)   # (2, 3Hp)
    return w_i, w_h, b_packed, H


# ------------------------------ forward -------------------------------------

def gru_cell_forward_packed(x, h, w_i, w_h, b_packed, *, H, block_b=256):
    B, I = x.shape
    Ip, threeHp = w_i.shape
    Hp = w_h.shape[0]
    assert w_h.shape[1] == threeHp and threeHp == 3 * Hp
    assert I <= Ip and H <= Hp
    out_dtype = h.dtype

    # ---- batch tiling: >=16 rows (bf16 tile), >=2 grid steps when possible ----
    tb = max(16, min(_round_up(block_b, 16), _round_up(max(B, 1), 16)))
    if B >= 32:
        # v7x megacore: make sure the (parallel) batch axis has >= 2 steps.
        tb = min(tb, _round_up((B + 1) // 2, 16))
    Bp = _round_up(B, tb)
    grid = (Bp // tb,)

    x_p = x if (Bp == B and Ip == I) else jnp.pad(x, ((0, Bp - B), (0, Ip - I)))
    h_p = h if (Bp == B and Hp == H) else jnp.pad(h, ((0, Bp - B), (0, Hp - H)))

    # ---- VMEM budget from hardware info (128 MiB on v5e/v6e, 64 MiB on v7x) ----
    try:
        vmem_cap = int(getattr(pltpu.get_tpu_info(), "vmem_capacity_bytes",
                               64 << 20))
    except Exception:
        vmem_cap = 64 << 20

    def run(buffered_weights):
        weight_bytes = (Ip + Hp) * threeHp * 2 + 2 * threeHp * 4
        weight_bufs = 1 if buffered_weights else 2
        act_tile = (tb * Ip * x_p.dtype.itemsize
                    + tb * Hp * h_p.dtype.itemsize
                    + tb * Hp * jnp.dtype(out_dtype).itemsize)
        scratch = 2 * tb * threeHp * 4 + 4 * tb * Hp * 4   # gi/gh + epilogue f32
        need = weight_bytes * weight_bufs + 2 * act_tile + scratch
        vmem_limit = int(min(max(need * 5 // 4 + (2 << 20), 16 << 20),
                             vmem_cap * 85 // 100))

        wkw = {"pipeline_mode": pl.Buffered(1)} if buffered_weights else {}
        in_specs = [
            pl.BlockSpec((tb, Ip), lambda b: (b, 0)),               # x tile
            pl.BlockSpec((tb, Hp), lambda b: (b, 0)),               # h tile
            pl.BlockSpec((Ip, threeHp), lambda b: (0, 0), **wkw),   # W_i resident
            pl.BlockSpec((Hp, threeHp), lambda b: (0, 0), **wkw),   # W_h resident
            pl.BlockSpec((2, threeHp), lambda b: (0, 0), **wkw),    # bias resident
        ]
        return pl.pallas_call(
            _gru_cell_kernel,
            out_shape=jax.ShapeDtypeStruct((Bp, Hp), out_dtype),
            grid=grid,
            in_specs=in_specs,
            out_specs=pl.BlockSpec((tb, Hp), lambda b: (b, 0)),
            compiler_params=pltpu.CompilerParams(
                dimension_semantics=("parallel",),
                vmem_limit_bytes=vmem_limit),
        )(x_p, h_p, w_i, w_h, b_packed)

    try:
        out = run(True)
    except Exception:
        # Fallback if this JAX build rejects single-buffered pipeline_mode.
        out = run(False)

    h_new = out[:B, :H]
    if h_new.dtype != h.dtype:
        h_new = h_new.astype(h.dtype)
    return h_new, h_new


def gru_cell_forward(x, h, w_ih, w_hh, b_ih, b_hh, *, block_b=256):
    """Convenience wrapper: pack params (once) + run the kernel."""
    w_i, w_h, b_packed, H = pack_gru_params(w_ih, w_hh, b_ih, b_hh)
    return gru_cell_forward_packed(x, h, w_i, w_h, b_packed, H=H,
                                   block_b=block_b)


# ----------------------------- references -----------------------------------

def _reference_gru_cell_f32(x, h, w_ih, w_hh, b_ih, b_hh):
    H = h.shape[-1]
    gi = x @ w_ih.T + b_ih
    gh = h @ w_hh.T + b_hh
    i_r, i_z, i_n = gi[:, :H], gi[:, H:2 * H], gi[:, 2 * H:]
    h_r, h_z, h_n = gh[:, :H], gh[:, H:2 * H], gh[:, 2 * H:]
    r = jax.nn.sigmoid(i_r + h_r)
    z = jax.nn.sigmoid(i_z + h_z)
    n = jnp.tanh(i_n + r * h_n)
    return (1.0 - z) * n + z * h


def _reference_gru_cell_bf16(x, h, w_ih, w_hh, b_ih, b_hh):
    # Matches the kernel's numerics: bf16 MXU operands, f32 accumulation.
    H = h.shape[-1]
    xb = x.astype(jnp.bfloat16)
    hb = h.astype(jnp.bfloat16)
    gi = jnp.dot(xb, w_ih.T.astype(jnp.bfloat16),
                 preferred_element_type=jnp.float32) + b_ih
    gh = jnp.dot(hb, w_hh.T.astype(jnp.bfloat16),
                 preferred_element_type=jnp.float32) + b_hh
    i_r, i_z, i_n = gi[:, :H], gi[:, H:2 * H], gi[:, 2 * H:]
    h_r, h_z, h_n = gh[:, :H], gh[:, H:2 * H], gh[:, 2 * H:]
    r = jax.nn.sigmoid(i_r + h_r)
    z = jax.nn.sigmoid(i_z + h_z)
    n = jnp.tanh(i_n + r * h_n)
    return n + z * (h.astype(jnp.float32) - n)


if __name__ == "__main__":
    B = 16         # batch
    I = 16         # in_features
    H = 32         # hidden (out_features)

    key = jax.random.PRNGKey(0)
    kx, kh, k1, k2, k3, k4 = jax.random.split(key, 6)

    # Same shapes as nn.GRUCell(I, H): weight_ih (3H, I), weight_hh (3H, H),
    # bias_ih / bias_hh (3H,)
    bound = 1.0 / jnp.sqrt(jnp.float32(H))
    w_ih = jax.random.uniform(k1, (3 * H, I), jnp.float32, -bound, bound)
    w_hh = jax.random.uniform(k2, (3 * H, H), jnp.float32, -bound, bound)
    b_ih = jax.random.uniform(k3, (3 * H,), jnp.float32, -bound, bound)
    b_hh = jax.random.uniform(k4, (3 * H,), jnp.float32, -bound, bound)

    x = jax.random.normal(kx, (B, I), jnp.float32)
    h0 = jax.random.normal(kh, (B, H), jnp.float32)

    h_new, h_new2 = gru_cell_forward(x, h0, w_ih, w_hh, b_ih, b_hh)
    jax.block_until_ready(h_new)

    ref_bf16 = _reference_gru_cell_bf16(x, h0, w_ih, w_hh, b_ih, b_hh)
    ref_f32 = _reference_gru_cell_f32(x, h0, w_ih, w_hh, b_ih, b_hh)

    assert h_new.shape == (B, H)
    assert h_new2.shape == (B, H)
    # Tight check against a reference with matching (bf16-MXU) numerics.
    assert jnp.allclose(h_new, ref_bf16, atol=2e-3, rtol=2e-3)
    # Loose semantic check against the pure-f32 PyTorch-equivalent math.
    assert jnp.allclose(h_new, ref_f32, atol=3e-2, rtol=3e-2)

    print("KERNEL_OK")
</pallas_src>

<mosaic_0001>
module attributes {stable_mosaic.version = 11 : i64} {
  func.func @_gru_cell_kernel(%arg0: i32, %arg1: memref<16x128xf32, #tpu.memory_space<vmem>>, %arg2: memref<16x128xf32, #tpu.memory_space<vmem>>, %arg3: memref<128x384xbf16, #tpu.memory_space<vmem>>, %arg4: memref<128x384xbf16, #tpu.memory_space<vmem>>, %arg5: memref<2x384xf32, #tpu.memory_space<vmem>>, %arg6: memref<16x128xf32, #tpu.memory_space<vmem>>) attributes {dimension_semantics = [#tpu.dimension_semantics<parallel>], iteration_bounds = array<i64: 1>, scalar_prefetch = 0 : i64, scratch_operands = 0 : i64, tpu.core_type = #tpu.core_type<tc>, window_params = [{transform_indices = @transform_0, window_bounds = array<i64: 16, 128>}, {transform_indices = @transform_1, window_bounds = array<i64: 16, 128>}, {pipeline_mode = #tpu.pipeline_mode<synchronous>, transform_indices = @transform_2, window_bounds = array<i64: 128, 384>}, {pipeline_mode = #tpu.pipeline_mode<synchronous>, transform_indices = @transform_3, window_bounds = array<i64: 128, 384>}, {pipeline_mode = #tpu.pipeline_mode<synchronous>, transform_indices = @transform_4, window_bounds = array<i64: 2, 384>}, {transform_indices = @transform_5, window_bounds = array<i64: 16, 128>}]} {
    %c0 = arith.constant 0 : index
    %c0_0 = arith.constant 0 : index
    %0 = vector.load %arg1[%c0, %c0_0] : memref<16x128xf32, #tpu.memory_space<vmem>>, vector<16x128xf32>
    %1 = arith.truncf %0 : vector<16x128xf32> to vector<16x128xbf16>
    %c0_1 = arith.constant 0 : index
    %c0_2 = arith.constant 0 : index
    %2 = vector.load %arg2[%c0_1, %c0_2] : memref<16x128xf32, #tpu.memory_space<vmem>>, vector<16x128xf32>
    %3 = arith.truncf %2 : vector<16x128xf32> to vector<16x128xbf16>
    %c0_3 = arith.constant 0 : index
    %c0_4 = arith.constant 0 : index
    %4 = vector.load %arg3[%c0_3, %c0_4] : memref<128x384xbf16, #tpu.memory_space<vmem>>, vector<128x384xbf16>
    %cst = arith.constant dense<0.000000e+00> : vector<16x384xf32>
    %5 = tpu.matmul %1, %4, %cst {dimension_numbers = #tpu.dot_dimension_numbers<[1], [0], [0], [1], [0, 0, 1, 1], [], []>} : vector<16x128xbf16>, vector<128x384xbf16>, vector<16x384xf32> -> vector<16x384xf32>
    %c0_5 = arith.constant 0 : index
    %c0_6 = arith.constant 0 : index
    %6 = vector.load %arg5[%c0_5, %c0_6] : memref<2x384xf32, #tpu.memory_space<vmem>>, vector<1x384xf32>
    %7 = vector.broadcast %6 : vector<1x384xf32> to vector<16x384xf32>
    %8 = arith.addf %5, %7 : vector<16x384xf32>
    %c0_7 = arith.constant 0 : index
    %c0_8 = arith.constant 0 : index
    %9 = vector.load %arg4[%c0_7, %c0_8] : memref<128x384xbf16, #tpu.memory_space<vmem>>, vector<128x384xbf16>
    %cst_9 = arith.constant dense<0.000000e+00> : vector<16x384xf32>
    %10 = tpu.matmul %3, %9, %cst_9 {dimension_numbers = #tpu.dot_dimension_numbers<[1], [0], [0], [1], [0, 0, 1, 1], [], []>} : vector<16x128xbf16>, vector<128x384xbf16>, vector<16x384xf32> -> vector<16x384xf32>
    %c1 = arith.constant 1 : index
    %c0_10 = arith.constant 0 : index
    %11 = vector.load %arg5[%c1, %c0_10] : memref<2x384xf32, #tpu.memory_space<vmem>>, vector<1x384xf32>
    %12 = vector.broadcast %11 : vector<1x384xf32> to vector<16x384xf32>
    %13 = arith.addf %10, %12 : vector<16x384xf32>
    %14 = vector.extract_strided_slice %8 {offsets = [0, 0], sizes = [16, 128], strides = [1, 1]} : vector<16x384xf32> to vector<16x128xf32>
    %15 = vector.extract_strided_slice %13 {offsets = [0, 0], sizes = [16, 128], strides = [1, 1]} : vector<16x384xf32> to vector<16x128xf32>
    %16 = arith.addf %14, %15 : vector<16x128xf32>
    %17 = arith.negf %16 : vector<16x128xf32>
    %18 = math.exp %17 : vector<16x128xf32>
    %cst_11 = arith.constant 1.000000e+00 : f32
    %19 = vector.broadcast %cst_11 : f32 to vector<16x128xf32>
    %20 = arith.addf %19, %18 : vector<16x128xf32>
    %21 = arith.divf %19, %20 : vector<16x128xf32>
    %22 = vector.extract_strided_slice %8 {offsets = [0, 128], sizes = [16, 128], strides = [1, 1]} : vector<16x384xf32> to vector<16x128xf32>
    %23 = vector.extract_strided_slice %13 {offsets = [0, 128], sizes = [16, 128], strides = [1, 1]} : vector<16x384xf32> to vector<16x128xf32>
    %24 = arith.addf %22, %23 : vector<16x128xf32>
    %25 = arith.negf %24 : vector<16x128xf32>
    %26 = math.exp %25 : vector<16x128xf32>
    %cst_12 = arith.constant 1.000000e+00 : f32
    %27 = vector.broadcast %cst_12 : f32 to vector<16x128xf32>
    %28 = arith.addf %27, %26 : vector<16x128xf32>
    %29 = arith.divf %27, %28 : vector<16x128xf32>
    %30 = vector.extract_strided_slice %8 {offsets = [0, 256], sizes = [16, 128], strides = [1, 1]} : vector<16x384xf32> to vector<16x128xf32>
    %31 = vector.extract_strided_slice %13 {offsets = [0, 256], sizes = [16, 128], strides = [1, 1]} : vector<16x384xf32> to vector<16x128xf32>
    %32 = arith.mulf %21, %31 : vector<16x128xf32>
    %33 = arith.addf %30, %32 : vector<16x128xf32>
    %34 = math.tanh %33 : vector<16x128xf32>
    %35 = arith.subf %2, %34 : vector<16x128xf32>
    %36 = arith.mulf %29, %35 : vector<16x128xf32>
    %37 = arith.addf %34, %36 : vector<16x128xf32>
    %c0_13 = arith.constant 0 : index
    %c0_14 = arith.constant 0 : index
    %38 = vector.load %arg6[%c0_13, %c0_14] : memref<16x128xf32, #tpu.memory_space<vmem>>, vector<16x128xf32>
    tpu.vector_store %arg6[%c0_13, %c0_14], %37 {strides = array<i32>} : memref<16x128xf32, #tpu.memory_space<vmem>>, vector<16x128xf32>,
    return
  }
  func.func @transform_0(%arg0: i32) -> (i32, i32) {
    %c0_i32 = arith.constant 0 : i32
    %c0_i32_0 = arith.constant 0 : i32
    return %arg0, %c0_i32 : i32, i32
  }
  func.func @transform_1(%arg0: i32) -> (i32, i32) {
    %c0_i32 = arith.constant 0 : i32
    %c0_i32_0 = arith.constant 0 : i32
    return %arg0, %c0_i32 : i32, i32
  }
  func.func @transform_2(%arg0: i32) -> (i32, i32) {
    %c0_i32 = arith.constant 0 : i32
    %c0_i32_0 = arith.constant 0 : i32
    %c0_i32_1 = arith.constant 0 : i32
    return %c0_i32, %c0_i32_0 : i32, i32
  }
  func.func @transform_3(%arg0: i32) -> (i32, i32) {
    %c0_i32 = arith.constant 0 : i32
    %c0_i32_0 = arith.constant 0 : i32
    %c0_i32_1 = arith.constant 0 : i32
    return %c0_i32, %c0_i32_0 : i32, i32
  }
  func.func @transform_4(%arg0: i32) -> (i32, i32) {
    %c0_i32 = arith.constant 0 : i32
    %c0_i32_0 = arith.constant 0 : i32
    %c0_i32_1 = arith.constant 0 : i32
    return %c0_i32, %c0_i32_0 : i32, i32
  }
  func.func @transform_5(%arg0: i32) -> (i32, i32) {
    %c0_i32 = arith.constant 0 : i32
    %c0_i32_0 = arith.constant 0 : i32
    return %arg0, %c0_i32 : i32, i32
  }
}

module attributes {stable_mosaic.version = 11 : i64} {
  func.func @_gru_cell_kernel(%arg0: i32, %arg1: memref<16x128xf32, #tpu.memory_space<vmem>>, %arg2: memref<16x128xf32, #tpu.memory_space<vmem>>, %arg3: memref<128x384xbf16, #tpu.memory_space<vmem>>, %arg4: memref<128x384xbf16, #tpu.memory_space<vmem>>, %arg5: memref<2x384xf32, #tpu.memory_space<vmem>>, %arg6: memref<16x128xf32, #tpu.memory_space<vmem>>) attributes {dimension_semantics = [#tpu.dimension_semantics<parallel>], iteration_bounds = array<i64: 1>, scalar_prefetch = 0 : i64, scratch_operands = 0 : i64, tpu.core_type = #tpu.core_type<tc>, window_params = [{transform_indices = @transform_0, window_bounds = array<i64: 16, 128>}, {transform_indices = @transform_1, window_bounds = array<i64: 16, 128>}, {pipeline_mode = #tpu.pipeline_mode<synchronous>, transform_indices = @transform_2, window_bounds = array<i64: 128, 384>}, {pipeline_mode = #tpu.pipeline_mode<synchronous>, transform_indices = @transform_3, window_bounds = array<i64: 128, 384>}, {pipeline_mode = #tpu.pipeline_mode<synchronous>, transform_indices = @transform_4, window_bounds = array<i64: 2, 384>}, {transform_indices = @transform_5, window_bounds = array<i64: 16, 128>}]} {
    %c0 = arith.constant 0 : index
    %c0_0 = arith.constant 0 : index
    %0 = vector.load %arg1[%c0, %c0_0] : memref<16x128xf32, #tpu.memory_space<vmem>>, vector<16x128xf32>
    %1 = arith.truncf %0 : vector<16x128xf32> to vector<16x128xbf16>
    %c0_1 = arith.constant 0 : index
    %c0_2 = arith.constant 0 : index
    %2 = vector.load %arg2[%c0_1, %c0_2] : memref<16x128xf32, #tpu.memory_space<vmem>>, vector<16x128xf32>
    %3 = arith.truncf %2 : vector<16x128xf32> to vector<16x128xbf16>
    %c0_3 = arith.constant 0 : index
    %c0_4 = arith.constant 0 : index
    %4 = vector.load %arg3[%c0_3, %c0_4] : memref<128x384xbf16, #tpu.memory_space<vmem>>, vector<128x384xbf16>
    %cst = arith.constant dense<0.000000e+00> : vector<16x384xf32>
    %5 = tpu.matmul %1, %4, %cst {dimension_numbers = #tpu.dot_dimension_numbers<[1], [0], [0], [1], [0, 0, 1, 1], [], []>} : vector<16x128xbf16>, vector<128x384xbf16>, vector<16x384xf32> -> vector<16x384xf32>
    %c0_5 = arith.constant 0 : index
    %c0_6 = arith.constant 0 : index
    %6 = vector.load %arg5[%c0_5, %c0_6] : memref<2x384xf32, #tpu.memory_space<vmem>>, vector<1x384xf32>
    %7 = vector.broadcast %6 : vector<1x384xf32> to vector<16x384xf32>
    %8 = arith.addf %5, %7 : vector<16x384xf32>
    %c0_7 = arith.constant 0 : index
    %c0_8 = arith.constant 0 : index
    %9 = vector.load %arg4[%c0_7, %c0_8] : memref<128x384xbf16, #tpu.memory_space<vmem>>, vector<128x384xbf16>
    %cst_9 = arith.constant dense<0.000000e+00> : vector<16x384xf32>
    %10 = tpu.matmul %3, %9, %cst_9 {dimension_numbers = #tpu.dot_dimension_numbers<[1], [0], [0], [1], [0, 0, 1, 1], [], []>} : vector<16x128xbf16>, vector<128x384xbf16>, vector<16x384xf32> -> vector<16x384xf32>
    %c1 = arith.constant 1 : index
    %c0_10 = arith.constant 0 : index
    %11 = vector.load %arg5[%c1, %c0_10] : memref<2x384xf32, #tpu.memory_space<vmem>>, vector<1x384xf32>
    %12 = vector.broadcast %11 : vector<1x384xf32> to vector<16x384xf32>
    %13 = arith.addf %10, %12 : vector<16x384xf32>
    %14 = vector.extract_strided_slice %8 {offsets = [0, 0], sizes = [16, 128], strides = [1, 1]} : vector<16x384xf32> to vector<16x128xf32>
    %15 = vector.extract_strided_slice %13 {offsets = [0, 0], sizes = [16, 128], strides = [1, 1]} : vector<16x384xf32> to vector<16x128xf32>
    %16 = arith.addf %14, %15 : vector<16x128xf32>
    %17 = arith.negf %16 : vector<16x128xf32>
    %18 = math.exp %17 : vector<16x128xf32>
    %cst_11 = arith.constant 1.000000e+00 : f32
    %19 = vector.broadcast %cst_11 : f32 to vector<16x128xf32>
    %20 = arith.addf %19, %18 : vector<16x128xf32>
    %21 = arith.divf %19, %20 : vector<16x128xf32>
    %22 = vector.extract_strided_slice %8 {offsets = [0, 128], sizes = [16, 128], strides = [1, 1]} : vector<16x384xf32> to vector<16x128xf32>
    %23 = vector.extract_strided_slice %13 {offsets = [0, 128], sizes = [16, 128], strides = [1, 1]} : vector<16x384xf32> to vector<16x128xf32>
    %24 = arith.addf %22, %23 : vector<16x128xf32>
    %25 = arith.negf %24 : vector<16x128xf32>
    %26 = math.exp %25 : vector<16x128xf32>
    %cst_12 = arith.constant 1.000000e+00 : f32
    %27 = vector.broadcast %cst_12 : f32 to vector<16x128xf32>
    %28 = arith.addf %27, %26 : vector<16x128xf32>
    %29 = arith.divf %27, %28 : vector<16x128xf32>
    %30 = vector.extract_strided_slice %8 {offsets = [0, 256], sizes = [16, 128], strides = [1, 1]} : vector<16x384xf32> to vector<16x128xf32>
    %31 = vector.extract_strided_slice %13 {offsets = [0, 256], sizes = [16, 128], strides = [1, 1]} : vector<16x384xf32> to vector<16x128xf32>
    %32 = arith.mulf %21, %31 : vector<16x128xf32>
    %33 = arith.addf %30, %32 : vector<16x128xf32>
    %34 = math.tanh %33 : vector<16x128xf32>
    %35 = arith.subf %2, %34 : vector<16x128xf32>
    %36 = arith.mulf %29, %35 : vector<16x128xf32>
    %37 = arith.addf %34, %36 : vector<16x128xf32>
    %c0_13 = arith.constant 0 : index
    %c0_14 = arith.constant 0 : index
    %38 = vector.load %arg6[%c0_13, %c0_14] : memref<16x128xf32, #tpu.memory_space<vmem>>, vector<16x128xf32>
    tpu.vector_store %arg6[%c0_13, %c0_14], %37 {strides = array<i32>} : memref<16x128xf32, #tpu.memory_space<vmem>>, vector<16x128xf32>,
    return
  }
  func.func @transform_0(%arg0: i32) -> (i32, i32) {
    %c0_i32 = arith.constant 0 : i32
    %c0_i32_0 = arith.constant 0 : i32
    return %arg0, %c0_i32 : i32, i32
  }
  func.func @transform_1(%arg0: i32) -> (i32, i32) {
    %c0_i32 = arith.constant 0 : i32
    %c0_i32_0 = arith.constant 0 : i32
    return %arg0, %c0_i32 : i32, i32
  }
  func.func @transform_2(%arg0: i32) -> (i32, i32) {
    %c0_i32 = arith.constant 0 : i32
    %c0_i32_0 = arith.constant 0 : i32
    %c0_i32_1 = arith.constant 0 : i32
    return %c0_i32, %c0_i32_0 : i32, i32
  }
  func.func @transform_3(%arg0: i32) -> (i32, i32) {
    %c0_i32 = arith.constant 0 : i32
    %c0_i32_0 = arith.constant 0 : i32
    %c0_i32_1 = arith.constant 0 : i32
    return %c0_i32, %c0_i32_0 : i32, i32
  }
  func.func @transform_4(%arg0: i32) -> (i32, i32) {
    %c0_i32 = arith.constant 0 : i32
    %c0_i32_0 = arith.constant 0 : i32
    %c0_i32_1 = arith.constant 0 : i32
    return %c0_i32, %c0_i32_0 : i32, i32
  }
  func.func @transform_5(%arg0: i32) -> (i32, i32) {
    %c0_i32 = arith.constant 0 : i32
    %c0_i32_0 = arith.constant 0 : i32
    return %arg0, %c0_i32 : i32, i32
  }
}

</mosaic_0001>

<bundles_post_ra>
// kernel: tpu_custom_call.1
= control target key start
LH: loop header
LB: loop body
LE: loop exit
PB: predicated region body
PF: predicated region fallthrough
CT: control target
= control target key end

     0   :  { %10 = vsyncpa [#allocation3], 0  ;;  %s1160_s0 = inlined_call_operand.hbm [shape: f32[16,128], index: 0, kind: input, shape index: {}]   ;;  %s1161_s1 = inlined_call_operand.hbm [shape: f32[16,128], index: 1, kind: input, shape index: {}]   ;;  %s1162_s2 = inlined_call_operand.hbm [shape: bf16[128,384], index: 2, kind: input, shape index: {}]   ;;  %s1163_s3 = inlined_call_operand.hbm [shape: bf16[128,384], index: 3, kind: input, shape index: {}]   ;;  %s1164_s4 = inlined_call_operand.hbm [shape: f32[2,384], index: 4, kind: input, shape index: {}]   ;;  %s1165_s5 = inlined_call_operand.hbm [shape: f32[16,128], index: 5, kind: output, shape index: {}]  }
   0x1   :  { %11 = vsyncpa [#allocation6], 0 }
   0x2   :  { %12 = vsyncpa [#allocation9], 0 }
   0x3   :  { %13 = vsyncpa [#allocation4], 0  ;;  %s31_s20 = sshll.u32 %s1161_s1, 4  ;;  %s1065_s21 = smov [#allocation5]   ;;  %s32_s20 = int_to_ptr.hbm [resolvable:$true] %s31_s20 }
   0x4   :  { %s33_s22 = sshll.u32 %s1065_s21, 4  ;;  %s1066_s23 = smov 128   ;;  %s34_s22 = int_to_ptr.vmem [resolvable:$true] %s33_s22 }
   0x5   :  { %s1067_s24 = smov 8   ;;  %s57_s27 = sshll.u32 %s1163_s3, 4  ;;  %s58_s27 = int_to_ptr.hbm [resolvable:$true] %s57_s27 }
   0x6   :  { %39 = dma.hbm_to_vmem [thread:$0]  %s32_s20, 256, %s34_s22, [#allocation6], %s1066_s23, %s1066_s23, %s1067_s24  }
   0x7   :  { %s1068_s28 = smov [#allocation8]   ;;  %s18_s1 = sshll.u32 %s1160_s0, 4  ;;  %s19_s1 = int_to_ptr.hbm [resolvable:$true] %s18_s1 }
   0x8   :  { %s59_s29 = sshll.u32 %s1068_s28, 4  ;;  %s1069_s7 = smov 192   ;;  %s60_s29 = int_to_ptr.vmem [resolvable:$true] %s59_s29 }
   0x9   :  { %s1070_s8 = smov 12   ;;  %s44_s11 = sshll.u32 %s1162_s2, 4  ;;  %s45_s11 = int_to_ptr.hbm [resolvable:$true] %s44_s11 }
   0xa   :  { %65 = dma.hbm_to_vmem [thread:$0]  %s58_s27, 3072, %s60_s29, [#allocation9], %s1069_s7, %s1069_s7, %s1070_s8  }
   0xb   :  { %s1071_s12 = smov [#allocation2]   ;;  %s1072_s3 = smov [#allocation7]  }
   0xc   :  { %s20_s13 = sshll.u32 %s1071_s12, 4  ;;  %s46_s14 = sshll.u32 %s1072_s3, 4  ;;  %s21_s13 = int_to_ptr.vmem [resolvable:$true] %s20_s13  ;;  %s47_s14 = int_to_ptr.vmem [resolvable:$true] %s46_s14 }
   0xd   :  { %26 = dma.hbm_to_vmem [thread:$0]  %s19_s1, 256, %s21_s13, [#allocation3], %s1066_s23, %s1066_s23, %s1067_s24  }
   0xe   :  { %s71_s16 = sshll.u32 %s1164_s4, 4  ;;  %s1073_s17 = smov [#allocation10]   ;;  %s72_s16 = int_to_ptr.hbm [resolvable:$true] %s71_s16 }
   0xf   :  { %52 = dma.hbm_to_vmem [thread:$0]  %s45_s11, 3072, %s47_s14, [#allocation6], %s1069_s7, %s1069_s7, %s1070_s8  }
  0x10   :  { %s73_s18 = sshll.u32 %s1073_s17, 4  ;;  %s74_s18 = int_to_ptr.vmem [resolvable:$true] %s73_s18 }
  0x11   :  { %76 = dma.hbm_to_vmem [thread:$0]  %s72_s16, 96, %s74_s18, [#allocation9]  }
  0x12   :  { %1057 = dma.done.wait [#allocation3], 256  }
  0x13   :  { %1058 = vsyncadd [#allocation3], 4294967040 }
  0x14   :  { %1059 = dma.done.wait [#allocation6], 3328  }
  0x15   :  { %1060 = vsyncadd [#allocation6], 4294963968 }
  0x16   :  { %1061 = dma.done.wait [#allocation9], 3168  }
  0x17   :  { %1062 = vsyncadd [#allocation9], 4294964128  ;;  %v725_v0 = vld [vmem:[#allocation7 + $0xa8] sm:$0xf]  ;;  %v857_v1 = vld [vmem:[#allocation7 + $0xb0] sm:$0xf0] }
  0x18   :  { %v821_v2 = vld [vmem:[#allocation8 + $0xa8] sm:$0xf]  ;;  %v726_v3 = vor.u32 %v857_v1, %v725_v0  ;;  %v881_v4 = vld [vmem:[#allocation8 + $0xb0] sm:$0xf0]  ;;  %v713_v5 = vld [vmem:[#allocation7 + $0x90] sm:$0xf] }
  0x19   :  { %v854_v6 = vld [vmem:[#allocation7 + $0x98] sm:$0xf0]  ;;  %v822_v7 = vor.u32 %v881_v4, %v821_v2  ;;  %v809_v8 = vld [vmem:[#allocation8 + $0x90] sm:$0xf]  ;;  %v856_v10 = vld [vmem:[#allocation7 + $0xac] sm:$0xf] }
  0x1a   :  { %v878_v9 = vld [vmem:[#allocation8 + $0x98] sm:$0xf0]  ;;  %271 = vmatpush.bf16.msra.mxu0 %v726_v3  ;;  %v714_v11 = vor.u32 %v854_v6, %v713_v5  ;;  %v727_v12 = vld [vmem:[#allocation7 + $0xb4] sm:$0xf0]  ;;  %v851_v16 = vld [vmem:[#allocation7 + $0x80] sm:$0xf0] }
  0x1b   :  { %482 = vmatpush.bf16.msra.mxu3 %v822_v7  ;;  %v810_v13 = vor.u32 %v878_v9, %v809_v8  ;;  %v730_v14 = vor.u32 %v856_v10, %v727_v12  ;;  %v701_v15 = vld [vmem:[#allocation7 + $0x78] sm:$0xf]  ;;  %v853_v17 = vld [vmem:[#allocation7 + $0x94] sm:$0xf]  ;;  %v875_v19 = vld [vmem:[#allocation8 + $0x80] sm:$0xf0] }
  0x1c   :  { %v797_v18 = vld [vmem:[#allocation8 + $0x78] sm:$0xf]  ;;  %v715_v20 = vld [vmem:[#allocation7 + $0x9c] sm:$0xf0]  ;;  %v702_v22 = vor.u32 %v851_v16, %v701_v15  ;;  %v850_v23 = vld [vmem:[#allocation7 + $0x7c] sm:$0xf] }
  0x1d   :  { %285 = vmatpush.bf16.msra.mxu1 %v730_v14  ;;  %v718_v21 = vor.u32 %v853_v17, %v715_v20  ;;  %v703_v24 = vld [vmem:[#allocation7 + $0x84] sm:$0xf0]  ;;  %v798_v25 = vor.u32 %v875_v19, %v797_v18  ;;  %v689_v26 = vld [vmem:[#allocation7 + $0x60] sm:$0xf]  ;;  %v848_v27 = vld [vmem:[#allocation7 + $0x68] sm:$0xf0] }
  0x1e   :  { %272 = vmatpush.bf16.msra.mxu0 %v714_v11  ;;  %v785_v28 = vld [vmem:[#allocation8 + $0x60] sm:$0xf]  ;;  %v872_v29 = vld [vmem:[#allocation8 + $0x68] sm:$0xf0]  ;;  %v706_v30 = vor.u32 %v850_v23, %v703_v24  ;;  %v690_v31 = vor.u32 %v848_v27, %v689_v26  ;;  %v847_v32 = vld [vmem:[#allocation7 + $0x64] sm:$0xf] }
  0x1f   :  { %483 = vmatpush.bf16.msra.mxu3 %v810_v13  ;;  %v691_v33 = vld [vmem:[#allocation7 + $0x6c] sm:$0xf0]  ;;  %v786_v34 = vor.u32 %v872_v29, %v785_v28  ;;  %v677_v35 = vld [vmem:[#allocation7 + $0x48] sm:$0xf]  ;;  %v845_v36 = vld [vmem:[#allocation7 + $0x50] sm:$0xf0] }
  0x20   :  { %v773_v37 = vld [vmem:[#allocation8 + $0x48] sm:$0xf]  ;;  %v869_v38 = vld [vmem:[#allocation8 + $0x50] sm:$0xf0]  ;;  %v694_v39 = vor.u32 %v847_v32, %v691_v33  ;;  %v678_v40 = vor.u32 %v845_v36, %v677_v35  ;;  %v844_v41 = vld [vmem:[#allocation7 + $0x4c] sm:$0xf] }
  0x21   :  { %286 = vmatpush.bf16.msra.mxu1 %v718_v21  ;;  %v679_v42 = vld [vmem:[#allocation7 + $0x54] sm:$0xf0]  ;;  %v774_v43 = vor.u32 %v869_v38, %v773_v37  ;;  %v665_v44 = vld [vmem:[#allocation7 + $0x30] sm:$0xf]  ;;  %v842_v45 = vld [vmem:[#allocation7 + $0x38] sm:$0xf0] }
  0x22   :  { %273 = vmatpush.bf16.msra.mxu0 %v702_v22  ;;  %v733_v46 = vld [vmem:[#allocation7 + $0xb0] sm:$0xf]  ;;  %v866_v48 = vld [vmem:[#allocation8 + $0x38] sm:$0xf0]  ;;  %v682_v50 = vor.u32 %v844_v41, %v679_v42  ;;  %v841_v51 = vld [vmem:[#allocation7 + $0x34] sm:$0xf]  ;;  %v666_v53 = vor.u32 %v842_v45, %v665_v44 }
  0x23   :  { %484 = vmatpush.bf16.msra.mxu3 %v798_v25  ;;  %v761_v47 = vld [vmem:[#allocation8 + $0x30] sm:$0xf]  ;;  %v858_v49 = vld [vmem:[#allocation7 + $0xb8] sm:$0xf0]  ;;  %v667_v54 = vld [vmem:[#allocation7 + $0x3c] sm:$0xf0] }
  0x24   :  { %v734_v52 = vor.u32 %v858_v49, %v733_v46  ;;  %v721_v55 = vld [vmem:[#allocation7 + $0x98] sm:$0xf]  ;;  %v855_v56 = vld [vmem:[#allocation7 + $0xa0] sm:$0xf0]  ;;  %v762_v57 = vor.u32 %v866_v48, %v761_v47  ;;  %v709_v63 = vld [vmem:[#allocation7 + $0x80] sm:$0xf]  ;;  %v670_v1 = vor.u32 %v841_v51, %v667_v54 }
  0x25   :  { %287 = vmatpush.bf16.msra.mxu1 %v706_v30  ;;  %v653_v58 = vld [vmem:[#allocation7 + $0x18] sm:$0xf]  ;;  %v839_v59 = vld [vmem:[#allocation7 + $0x20] sm:$0xf0]  ;;  %v722_v61 = vor.u32 %v855_v56, %v721_v55  ;;  %v852_v0 = vld [vmem:[#allocation7 + $0x88] sm:$0xf0] }
  0x26   :  { %274 = vmatpush.bf16.msra.mxu0 %v690_v31  ;;  %v749_v60 = vld [vmem:[#allocation8 + $0x18] sm:$0xf]  ;;  %299 = vmatpush.bf16.msra.mxu2 %v734_v52  ;;  %v863_v62 = vld [vmem:[#allocation8 + $0x20] sm:$0xf0]  ;;  %v654_v2 = vor.u32 %v839_v59, %v653_v58  ;;  %v838_v3 = vld [vmem:[#allocation7 + $0x1c] sm:$0xf]  ;;  %v710_v9 = vor.u32 %v852_v0, %v709_v63 }
  0x27   :  { %485 = vmatpush.bf16.msra.mxu3 %v786_v34  ;;  %v655_v4 = vld [vmem:[#allocation7 + $0x24] sm:$0xf0]  ;;  %v750_v5 = vor.u32 %v863_v62, %v749_v60  ;;  %v641_v6 = vld [vmem:[#allocation7] sm:$0xf]  ;;  %v836_v7 = vld [vmem:[#allocation7 + $0x8] sm:$0xf0] }
  0x28   :  { %v737_v8 = vld [vmem:[#allocation8] sm:$0xf]  ;;  %v860_v10 = vld [vmem:[#allocation8 + $0x8] sm:$0xf0]  ;;  %v823_v12 = vld [vmem:[#allocation8 + $0xb4] sm:$0xf0]  ;;  %v658_v13 = vor.u32 %v838_v3, %v655_v4  ;;  %v642_v18 = vor.u32 %v836_v7, %v641_v6 }
  0x29   :  { %288 = vmatpush.bf16.msra.mxu1 %v694_v39  ;;  %v880_v11 = vld [vmem:[#allocation8 + $0xac] sm:$0xf]  ;;  %v1126_v14 = vld [vmem:[#allocation5] sm:$0xff]  ;;  %v835_v15 = vld [vmem:[#allocation7 + $0x4] sm:$0xf]  ;;  %v738_v22 = vor.u32 %v860_v10, %v737_v8  ;;  %s1074_s2 = smov [#allocation11]  }
  0x2a   :  { %275 = vmatpush.bf16.msra.mxu0 %v678_v40  ;;  %300 = vmatpush.bf16.msra.mxu2 %v722_v61  ;;  %v697_v16 = vld [vmem:[#allocation7 + $0x68] sm:$0xf]  ;;  %v849_v17 = vld [vmem:[#allocation7 + $0x70] sm:$0xf0]  ;;  %v643_v19 = vld [vmem:[#allocation7 + $0xc] sm:$0xf0]  ;;  %v826_v23 = vor.u32 %v880_v11, %v823_v12 }
  0x2b   :  { %486 = vmatpush.bf16.msra.mxu3 %v774_v43  ;;  %v97_v20 = vld [vmem:[#allocation2] sm:$0xff]  ;;  %v98_v21 = vld [vmem:[#allocation2 + $0x8] sm:$0xff]  ;;  %v1128_v24 = vld [vmem:[#allocation5 + $0x8] sm:$0xff]  ;;  %v698_v29 = vor.u32 %v849_v17, %v697_v16  ;;  %v646_v30 = vor.u32 %v835_v15, %v643_v19  ;;  %s622_s4 = sshll.u32 %s1074_s2, 4  ;;  %s624_s21 = sshll.u32 %s1165_s5, 4  ;;  %s623_s4 = int_to_ptr.vmem [resolvable:$true] %s622_s4  ;;  %s625_s21 = int_to_ptr.hbm [resolvable:$true] %s624_s21 }
  0x2c   :  { %v829_v25 = vld [vmem:[#allocation8 + $0xb0] sm:$0xf]  ;;  %v882_v26 = vld [vmem:[#allocation8 + $0xb8] sm:$0xf0]  ;;  %v877_v27 = vld [vmem:[#allocation8 + $0x94] sm:$0xf]  ;;  %v1130_v31 = vpack.c.bf16 %v98_v21, %v97_v20  ;;  %v1134_v34 = vpack.c.bf16 %v1128_v24, %v1126_v14 }
  0x2d   :  { %289 = vmatpush.bf16.msra.mxu1 %v682_v50  ;;  %v811_v28 = vld [vmem:[#allocation8 + $0x9c] sm:$0xf0]  ;;  %v685_v32 = vld [vmem:[#allocation7 + $0x50] sm:$0xf]  ;;  %v846_v33 = vld [vmem:[#allocation7 + $0x58] sm:$0xf0]  ;;  %v830_v35 = vor.u32 %v882_v26, %v829_v25 }
  0x2e   :  { %276 = vmatpush.bf16.msra.mxu0 %v666_v53  ;;  %301 = vmatpush.bf16.msra.mxu2 %v710_v9  ;;  %v814_v36 = vor.u32 %v877_v27, %v811_v28  ;;  %v817_v37 = vld [vmem:[#allocation8 + $0x98] sm:$0xf]  ;;  %v879_v38 = vld [vmem:[#allocation8 + $0xa0] sm:$0xf0]  ;;  %v874_v39 = vld [vmem:[#allocation8 + $0x7c] sm:$0xf]  ;;  %v686_v41 = vor.u32 %v846_v33, %v685_v32 }
  0x2f   :  { %487 = vmatpush.bf16.msra.mxu3 %v762_v57  ;;  %v799_v40 = vld [vmem:[#allocation8 + $0x84] sm:$0xf0]  ;;  %v673_v42 = vld [vmem:[#allocation7 + $0x38] sm:$0xf]  ;;  %v843_v43 = vld [vmem:[#allocation7 + $0x40] sm:$0xf0]  ;;  %v818_v44 = vor.u32 %v879_v38, %v817_v37 }
  0x30   :  { %v802_v45 = vor.u32 %v874_v39, %v799_v40  ;;  %v805_v46 = vld [vmem:[#allocation8 + $0x80] sm:$0xf]  ;;  %v876_v47 = vld [vmem:[#allocation8 + $0x88] sm:$0xf0]  ;;  %v871_v48 = vld [vmem:[#allocation8 + $0x64] sm:$0xf]  ;;  %v674_v50 = vor.u32 %v843_v43, %v673_v42 }
  0x31   :  { %290 = vmatpush.bf16.msra.mxu1 %v670_v1  ;;  %v787_v49 = vld [vmem:[#allocation8 + $0x6c] sm:$0xf0]  ;;  %v661_v51 = vld [vmem:[#allocation7 + $0x20] sm:$0xf]  ;;  %v840_v52 = vld [vmem:[#allocation7 + $0x28] sm:$0xf0]  ;;  %v806_v53 = vor.u32 %v876_v47, %v805_v46 }
  0x32   :  { %277 = vmatpush.bf16.msra.mxu0 %v654_v2  ;;  %302 = vmatpush.bf16.msra.mxu2 %v698_v29  ;;  %v790_v54 = vor.u32 %v871_v48, %v787_v49  ;;  %v793_v55 = vld [vmem:[#allocation8 + $0x68] sm:$0xf]  ;;  %v873_v56 = vld [vmem:[#allocation8 + $0x70] sm:$0xf0]  ;;  %v868_v57 = vld [vmem:[#allocation8 + $0x4c] sm:$0xf]  ;;  %v662_v59 = vor.u32 %v840_v52, %v661_v51 }
  0x33   :  { %488 = vmatpush.bf16.msra.mxu3 %v750_v5  ;;  %v775_v58 = vld [vmem:[#allocation8 + $0x54] sm:$0xf0]  ;;  %v649_v60 = vld [vmem:[#allocation7 + $0x8] sm:$0xf]  ;;  %v837_v61 = vld [vmem:[#allocation7 + $0x10] sm:$0xf0]  ;;  %v794_v62 = vor.u32 %v873_v56, %v793_v55 }
  0x34   :  { %v778_v63 = vor.u32 %v868_v57, %v775_v58  ;;  %v781_v0 = vld [vmem:[#allocation8 + $0x50] sm:$0xf]  ;;  %v870_v1 = vld [vmem:[#allocation8 + $0x58] sm:$0xf0]  ;;  %v865_v2 = vld [vmem:[#allocation8 + $0x34] sm:$0xf]  ;;  %v650_v4 = vor.u32 %v837_v61, %v649_v60 }
  0x35   :  { %291 = vmatpush.bf16.msra.mxu1 %v658_v13  ;;  %v763_v3 = vld [vmem:[#allocation8 + $0x3c] sm:$0xf0]  ;;  %v782_v5 = vor.u32 %v870_v1, %v781_v0  ;;  %v769_v7 = vld [vmem:[#allocation8 + $0x38] sm:$0xf]  ;;  %v867_v8 = vld [vmem:[#allocation8 + $0x40] sm:$0xf0] }
  0x36   :  { %278 = vmatpush.bf16.msra.mxu0 %v642_v18  ;;  %303 = vmatpush.bf16.msra.mxu2 %v686_v41  ;;  %v766_v6 = vor.u32 %v865_v2, %v763_v3  ;;  %v862_v9 = vld [vmem:[#allocation8 + $0x1c] sm:$0xf]  ;;  %v751_v10 = vld [vmem:[#allocation8 + $0x24] sm:$0xf0]  ;;  %v770_v11 = vor.u32 %v867_v8, %v769_v7  ;;  %v757_v13 = vld [vmem:[#allocation8 + $0x20] sm:$0xf] }
  0x37   :  { %489 = vmatpush.bf16.msra.mxu3 %v738_v22  ;;  %v754_v12 = vor.u32 %v862_v9, %v751_v10  ;;  %v864_v15 = vld [vmem:[#allocation8 + $0x28] sm:$0xf0]  ;;  %v859_v16 = vld [vmem:[#allocation8 + $0x4] sm:$0xf]  ;;  %v739_v17 = vld [vmem:[#allocation8 + $0xc] sm:$0xf0] }
  0x38   :  { %v758_v18 = vor.u32 %v864_v15, %v757_v13  ;;  %v742_v19 = vor.u32 %v859_v16, %v739_v17  ;;  %v745_v20 = vld [vmem:[#allocation8 + $0x8] sm:$0xf]  ;;  %v861_v21 = vld [vmem:[#allocation8 + $0x10] sm:$0xf0] }
  0x39   :  { %292 = vmatpush.bf16.msra.mxu1 %v646_v30  ;;  %279 = vmatmul.bf16.vlgmr.msra.gmra.mxu0 %v1130_v31  ;;  %v746_v22 = vor.u32 %v861_v21, %v745_v20  ;;  %v1144_v26 = vld [vmem:[#allocation10 + $0x1] ss:$2 sm:$0x7] }
  0x3a   :  { %496 = vmatpush.bf16.msrb.mxu0 %v826_v23  ;;  %490 = vmatmul.bf16.vlgmr.msra.gmra.mxu3 %v1134_v34  ;;  %v1142_v23 = vld [vmem:[#allocation10] ss:$2 sm:$0x7]  ;;  %v348_v28 = vperm.slane %v1144_v26, 0 }
  0x3b   :  { %304 = vmatpush.bf16.msra.mxu2 %v674_v50  ;;  %v137_v27 = vperm.slane %v1142_v23, 0  ;;  %v138_v43 = vperm.slane %v1142_v23, 1  ;;  %v139_v7 = vperm.slane %v1142_v23, 2 }
  0x3c   :  { %293 = vmatmul.bf16.vlgmr.msra.gmra.mxu1 %v1130_v31 }
  0x3d   :  { %510 = vmatpush.bf16.msrb.mxu1 %v830_v35 }
  0x3e   :  { %497 = vmatpush.bf16.msrb.mxu0 %v814_v36 }
  0x3f   :  { %305 = vmatpush.bf16.msra.mxu2 %v662_v59  ;;  %v350_v59 = vperm.slane %v1144_v26, 2 }
  0x41   :  { %511 = vmatpush.bf16.msrb.mxu1 %v818_v44 }
  0x42   :  { %498 = vmatpush.bf16.msrb.mxu0 %v802_v45  ;;  %v349_v45 = vperm.slane %v1144_v26, 1 }
  0x43   :  { %306 = vmatpush.bf16.msra.mxu2 %v650_v4 }
  0x45   :  { %512 = vmatpush.bf16.msrb.mxu1 %v806_v53 }
  0x46   :  { %499 = vmatpush.bf16.msrb.mxu0 %v790_v54  ;;  %307 = vmatmul.bf16.vlgmr.msra.gmra.mxu2 %v1130_v31 }
  0x49   :  { %513 = vmatpush.bf16.msrb.mxu1 %v794_v62 }
  0x4a   :  { %500 = vmatpush.bf16.msrb.mxu0 %v778_v63 }
  0x4d   :  { %514 = vmatpush.bf16.msrb.mxu1 %v782_v5 }
  0x4e   :  { %501 = vmatpush.bf16.msrb.mxu0 %v766_v6 }
  0x51   :  { %515 = vmatpush.bf16.msrb.mxu1 %v770_v11 }
  0x52   :  { %502 = vmatpush.bf16.msrb.mxu0 %v754_v12 }
  0x55   :  { %516 = vmatpush.bf16.msrb.mxu1 %v758_v18 }
  0x56   :  { %503 = vmatpush.bf16.msrb.mxu0 %v742_v19 }
  0x59   :  { %504 = vmatmul.bf16.vlgmr.msrb.gmra.mxu0 %v1134_v34  ;;  %517 = vmatpush.bf16.msrb.mxu1 %v746_v22 }
  0x5c   :  { %518 = vmatmul.bf16.vlgmr.msrb.gmra.mxu1 %v1134_v34 }
  0xb6   :  { %v280_v25 = vpop.f32.mrf.mxu0 }
  0xb7   :  { %v281_v29 = vadd.f32 %v280_v25, %v137_v27 }
  0xb9   :  { %v294_v37 = vpop.f32.mrf.mxu1 }
  0xba   :  { %v295_v47 = vadd.f32 %v294_v37, %v138_v43 }
  0xbd   :  { %v491_v30 = vpop.f32.mrf.mxu3 }
  0xbe   :  { %v492_v31 = vadd.f32 %v491_v30, %v348_v28  ;;  %v282_v33 = vpop.f32.mrf.mxu0 }
  0xbf   :  { %v283_v36 = vadd.f32 %v282_v33, %v137_v27 }
  0xc0   :  { %v524_v32 = vadd.f32 %v492_v31, %v281_v29 }
  0xc1   :  { %v296_v44 = vpop.f32.mrf.mxu1 }
  0xc2   :  { %v831_v35 = vmul.f32 -1.442695, %v524_v32  ;;  %v297_v63 = vadd.f32 %v296_v44, %v138_v43 }
  0xc4   :  { %893 = vpow2.f32 %v831_v35 }
  0xc5   :  { %v493_v38 = vpop.f32.mrf.mxu3 }
  0xc6   :  { %v494_v34 = vadd.f32 %v493_v38, %v348_v28 }
  0xc8   :  { %v525_v39 = vadd.f32 %v494_v34, %v283_v36 }
  0xc9   :  { %v308_v4 = vpop.f32.mrf.mxu2 }
  0xca   :  { %v894_v40 = vpop.eup %893  ;;  %v832_v41 = vmul.f32 -1.442695, %v525_v39  ;;  %v309_v18 = vadd.f32 %v308_v4, %v139_v7 }
  0xcb   :  { %v532_v42 = vadd.f32 1.0, %v894_v40 }
  0xcc   :  { %895 = vpow2.f32 %v832_v41 }
  0xcd   :  { %897 = vrcp.f32 %v532_v42  ;;  %vm539_vm0 = vweird.f32 %v532_v42  ;;  %v545_v58 = vand.u32 2147483648, %v532_v42  ;;  %v543_v60 = vand.u32 2147483647, %v532_v42 }
  0xcf   :  { %v546_v2 = vor.u32 1.1754944e-38, %v545_v58  ;;  %vm544_vm3 = vcmp.eq.f32.partialorder %v543_v60, 8.507059e+37 }
  0xd1   :  { %v310_v28 = vpop.f32.mrf.mxu2 }
  0xd2   :  { %v896_v46 = vpop.eup %895  ;;  %v311_v33 = vadd.f32 %v310_v28, %v139_v7 }
  0xd3   :  { %v898_v48 = vpop.eup %897  ;;  %v533_v49 = vadd.f32 1.0, %v896_v46 }
  0xd4   :  { %v535_v52 = vmul.f32 %v898_v48, %v532_v42  ;;  %vm540_vm1 = vweird.f32 %v898_v48 }
  0xd5   :  { %899 = vrcp.f32 %v533_v49  ;;  %vm541_vm2 = vmor %vm539_vm0, %vm540_vm1  ;;  %v560_v15 = vand.u32 2147483648, %v533_v49  ;;  %v558_v19 = vand.u32 2147483647, %v533_v49  ;;  %vm554_vm5 = vweird.f32 %v533_v49 }
  0xd6   :  { %v505_v50 = vpop.f32.mrf.mxu0  ;;  %v536_v54 = vsub.f32 1.0, %v535_v52 }
  0xd7   :  { %v506_v51 = vadd.f32 %v505_v50, %v349_v45  ;;  %v561_v23 = vor.u32 1.1754944e-38, %v560_v15  ;;  %vm559_vm7 = vcmp.eq.f32.partialorder %v558_v19, 8.507059e+37 }
  0xd8   :  { %v537_v57 = vmul.f32 %v898_v48, %v536_v54 }
  0xd9   :  { %v564_v53 = vadd.f32 %v506_v51, %v295_v47  ;;  %v519_v56 = vpop.f32.mrf.mxu1 }
  0xda   :  { %v538_v61 = vadd.f32 %v898_v48, %v537_v57  ;;  %v520_v6 = vadd.f32 %v519_v56, %v350_v59 }
  0xdb   :  { %v833_v55 = vmul.f32 -1.442695, %v564_v53  ;;  %v900_v62 = vpop.eup %899 }
  0xdc   :  { %v542_v1 = vsel %vm541_vm2, %v898_v48, %v538_v61  ;;  %v550_v5 = vmul.f32 %v900_v62, %v533_v49  ;;  %vm555_vm4 = vweird.f32 %v900_v62 }
  0xdd   :  { %901 = vpow2.f32 %v833_v55  ;;  %v547_v8 = vsel %vm544_vm3, %v546_v2, %v542_v1  ;;  %vm556_vm6 = vmor %vm554_vm5, %vm555_vm4 }
  0xde   :  { %v507_v0 = vpop.f32.mrf.mxu0  ;;  %v551_v10 = vsub.f32 1.0, %v550_v5  ;;  %v604_v17 = vmul.f32 %v547_v8, %v520_v6 }
  0xdf   :  { %v508_v3 = vadd.f32 %v507_v0, %v349_v45 }
  0xe0   :  { %v552_v13 = vmul.f32 %v900_v62, %v551_v10  ;;  %v606_v25 = vadd.f32 %v604_v17, %v309_v18 }
  0xe1   :  { %v565_v9 = vadd.f32 %v508_v3, %v297_v63  ;;  %v521_v20 = vpop.f32.mrf.mxu1 }
  0xe2   :  { %v553_v21 = vadd.f32 %v900_v62, %v552_v13  ;;  %v522_v26 = vadd.f32 %v521_v20, %v350_v59 }
  0xe3   :  { %v902_v11 = vpop.eup %901  ;;  %v834_v12 = vmul.f32 -1.442695, %v565_v9 }
  0xe4   :  { %v572_v16 = vadd.f32 1.0, %v902_v11  ;;  %v557_v22 = vsel %vm556_vm6, %v900_v62, %v553_v21 }
  0xe5   :  { %903 = vpow2.f32 %v834_v12  ;;  %v562_v27 = vsel %vm559_vm7, %v561_v23, %v557_v22 }
  0xe6   :  { %905 = vrcp.f32 %v572_v16  ;;  %v605_v32 = vmul.f32 %v562_v27, %v522_v26  ;;  %v585_v38 = vand.u32 2147483648, %v572_v16  ;;  %v583_v39 = vand.u32 2147483647, %v572_v16 }
  0xe7   :  { %907 = vtanh.f32 %v606_v25  ;;  %vm579_vm9 = vweird.f32 %v572_v16 }
  0xe8   :  { %v607_v37 = vadd.f32 %v605_v32, %v311_v33  ;;  %v586_v43 = vor.u32 1.1754944e-38, %v585_v38  ;;  %vm584_vm11 = vcmp.eq.f32.partialorder %v583_v39, 8.507059e+37 }
  0xeb   :  { %v904_v29 = vpop.eup %903 }
  0xec   :  { %v906_v30 = vpop.eup %905  ;;  %v573_v31 = vadd.f32 1.0, %v904_v29 }
  0xed   :  { %v575_v35 = vmul.f32 %v906_v30, %v572_v16  ;;  %vm580_vm8 = vweird.f32 %v906_v30  ;;  %v908_v40 = vpop.eup %907 }
  0xee   :  { %909 = vrcp.f32 %v573_v31  ;;  %vm581_vm10 = vmor %vm579_vm9, %vm580_vm8  ;;  %v610_v45 = vsub.f32 %v1126_v14, %v908_v40  ;;  %v600_v50 = vand.u32 2147483648, %v573_v31  ;;  %v598_v52 = vand.u32 2147483647, %v573_v31 }
  0xef   :  { %v576_v36 = vsub.f32 1.0, %v575_v35  ;;  %911 = vtanh.f32 %v607_v37  ;;  %vm594_vm13 = vweird.f32 %v573_v31 }
  0xf0   :  { %v601_v56 = vor.u32 1.1754944e-38, %v600_v50  ;;  %vm599_vm15 = vcmp.eq.f32.partialorder %v598_v52, 8.507059e+37 }
  0xf1   :  { %v577_v34 = vmul.f32 %v906_v30, %v576_v36 }
  0xf3   :  { %v578_v41 = vadd.f32 %v906_v30, %v577_v34 }
  0xf4   :  { %v910_v42 = vpop.eup %909 }
  0xf5   :  { %v590_v44 = vmul.f32 %v910_v42, %v573_v31  ;;  %v582_v46 = vsel %vm581_vm10, %v906_v30, %v578_v41  ;;  %vm595_vm12 = vweird.f32 %v910_v42  ;;  %v912_v54 = vpop.eup %911 }
  0xf6   :  { %v587_v47 = vsel %vm584_vm11, %v586_v43, %v582_v46  ;;  %vm596_vm14 = vmor %vm594_vm13, %vm595_vm12  ;;  %v611_v57 = vsub.f32 %v1128_v24, %v912_v54 }
  0xf7   :  { %v591_v48 = vsub.f32 1.0, %v590_v44  ;;  %v612_v49 = vmul.f32 %v610_v45, %v587_v47 }
  0xf9   :  { %v592_v51 = vmul.f32 %v910_v42, %v591_v48  ;;  %v614_v53 = vadd.f32 %v908_v40, %v612_v49 }
  0xfb   :  { %v593_v55 = vadd.f32 %v910_v42, %v592_v51  ;;  %616 = vst [vmem:[#allocation11] sm:$0xff] %v614_v53 }
  0xfd   :  { %v597_v58 = vsel %vm596_vm14, %v910_v42, %v593_v55 }
  0xfe   :  { %v602_v14 = vsel %vm599_vm15, %v601_v56, %v597_v58 }
  0xff   :  { %v613_v59 = vmul.f32 %v611_v57, %v602_v14 }
 0x101   :  { %v615_v60 = vadd.f32 %v912_v54, %v613_v59 }
 0x103   :  { %617 = vst [vmem:[#allocation11 + $0x8] sm:$0xff] %v615_v60 }
 0x104   :  { %630 = dma.vmem_to_hbm [thread:$0]  %s623_s4, 256, %s625_s21, [#allocation4], %s1066_s23, %s1066_s23, %s1067_s24  }
 0x105   :  { %1063 = dma.done.wait [#allocation4], 256  }
 0x106   :  { %1064 = vsyncadd [#allocation4], 4294967040 }
 0x107   :  { %635 = vsyncpa [#allocation3], 1 }
 0x108   :  { %636 = vsyncpa [#allocation6], 1 }
 0x109   :  { %637 = vsyncpa [#allocation9], 1 }
 0x10a   :  { %638 = vsyncpa [#allocation4], 1 }

// kernel: tpu_custom_call.1
= control target key start
LH: loop header
LB: loop body
LE: loop exit
PB: predicated region body
PF: predicated region fallthrough
CT: control target
= control target key end

     0   :  { %10 = vsyncpa [#allocation3], 0  ;;  %s1160_s0 = inlined_call_operand.hbm [shape: f32[16,128], index: 0, kind: input, shape index: {}]   ;;  %s1161_s1 = inlined_call_operand.hbm [shape: f32[16,128], index: 1, kind: input, shape index: {}]   ;;  %s1162_s2 = inlined_call_operand.hbm [shape: bf16[128,384], index: 2, kind: input, shape index: {}]   ;;  %s1163_s3 = inlined_call_operand.hbm [shape: bf16[128,384], index: 3, kind: input, shape index: {}]   ;;  %s1164_s4 = inlined_call_operand.hbm [shape: f32[2,384], index: 4, kind: input, shape index: {}]   ;;  %s1165_s5 = inlined_call_operand.hbm [shape: f32[16,128], index: 5, kind: output, shape index: {}]  }
   0x1   :  { %11 = vsyncpa [#allocation6], 0 }
   0x2   :  { %12 = vsyncpa [#allocation9], 0 }
   0x3   :  { %13 = vsyncpa [#allocation4], 0  ;;  %s31_s20 = sshll.u32 %s1161_s1, 4  ;;  %s1065_s21 = smov [#allocation5]   ;;  %s32_s20 = int_to_ptr.hbm [resolvable:$true] %s31_s20 }
   0x4   :  { %s33_s22 = sshll.u32 %s1065_s21, 4  ;;  %s1066_s23 = smov 128   ;;  %s34_s22 = int_to_ptr.vmem [resolvable:$true] %s33_s22 }
   0x5   :  { %s1067_s24 = smov 8   ;;  %s57_s27 = sshll.u32 %s1163_s3, 4  ;;  %s58_s27 = int_to_ptr.hbm [resolvable:$true] %s57_s27 }
   0x6   :  { %39 = dma.hbm_to_vmem [thread:$0]  %s32_s20, 256, %s34_s22, [#allocation6], %s1066_s23, %s1066_s23, %s1067_s24  }
   0x7   :  { %s1068_s28 = smov [#allocation8]   ;;  %s18_s1 = sshll.u32 %s1160_s0, 4  ;;  %s19_s1 = int_to_ptr.hbm [resolvable:$true] %s18_s1 }
   0x8   :  { %s59_s29 = sshll.u32 %s1068_s28, 4  ;;  %s1069_s7 = smov 192   ;;  %s60_s29 = int_to_ptr.vmem [resolvable:$true] %s59_s29 }
   0x9   :  { %s1070_s8 = smov 12   ;;  %s44_s11 = sshll.u32 %s1162_s2, 4  ;;  %s45_s11 = int_to_ptr.hbm [resolvable:$true] %s44_s11 }
   0xa   :  { %65 = dma.hbm_to_vmem [thread:$0]  %s58_s27, 3072, %s60_s29, [#allocation9], %s1069_s7, %s1069_s7, %s1070_s8  }
   0xb   :  { %s1071_s12 = smov [#allocation2]   ;;  %s1072_s3 = smov [#allocation7]  }
   0xc   :  { %s20_s13 = sshll.u32 %s1071_s12, 4  ;;  %s46_s14 = sshll.u32 %s1072_s3, 4  ;;  %s21_s13 = int_to_ptr.vmem [resolvable:$true] %s20_s13  ;;  %s47_s14 = int_to_ptr.vmem [resolvable:$true] %s46_s14 }
   0xd   :  { %26 = dma.hbm_to_vmem [thread:$0]  %s19_s1, 256, %s21_s13, [#allocation3], %s1066_s23, %s1066_s23, %s1067_s24  }
   0xe   :  { %s71_s16 = sshll.u32 %s1164_s4, 4  ;;  %s1073_s17 = smov [#allocation10]   ;;  %s72_s16 = int_to_ptr.hbm [resolvable:$true] %s71_s16 }
   0xf   :  { %52 = dma.hbm_to_vmem [thread:$0]  %s45_s11, 3072, %s47_s14, [#allocation6], %s1069_s7, %s1069_s7, %s1070_s8  }
  0x10   :  { %s73_s18 = sshll.u32 %s1073_s17, 4  ;;  %s74_s18 = int_to_ptr.vmem [resolvable:$true] %s73_s18 }
  0x11   :  { %76 = dma.hbm_to_vmem [thread:$0]  %s72_s16, 96, %s74_s18, [#allocation9]  }
  0x12   :  { %1057 = dma.done.wait [#allocation3], 256  }
  0x13   :  { %1058 = vsyncadd [#allocation3], 4294967040 }
  0x14   :  { %1059 = dma.done.wait [#allocation6], 3328  }
  0x15   :  { %1060 = vsyncadd [#allocation6], 4294963968 }
  0x16   :  { %1061 = dma.done.wait [#allocation9], 3168  }
  0x17   :  { %1062 = vsyncadd [#allocation9], 4294964128  ;;  %v725_v0 = vld [vmem:[#allocation7 + $0xa8] sm:$0xf]  ;;  %v857_v1 = vld [vmem:[#allocation7 + $0xb0] sm:$0xf0] }
  0x18   :  { %v821_v2 = vld [vmem:[#allocation8 + $0xa8] sm:$0xf]  ;;  %v726_v3 = vor.u32 %v857_v1, %v725_v0  ;;  %v881_v4 = vld [vmem:[#allocation8 + $0xb0] sm:$0xf0]  ;;  %v713_v5 = vld [vmem:[#allocation7 + $0x90] sm:$0xf] }
  0x19   :  { %v854_v6 = vld [vmem:[#allocation7 + $0x98] sm:$0xf0]  ;;  %v822_v7 = vor.u32 %v881_v4, %v821_v2  ;;  %v809_v8 = vld [vmem:[#allocation8 + $0x90] sm:$0xf]  ;;  %v856_v10 = vld [vmem:[#allocation7 + $0xac] sm:$0xf] }
  0x1a   :  { %v878_v9 = vld [vmem:[#allocation8 + $0x98] sm:$0xf0]  ;;  %271 = vmatpush.bf16.msra.mxu0 %v726_v3  ;;  %v714_v11 = vor.u32 %v854_v6, %v713_v5  ;;  %v727_v12 = vld [vmem:[#allocation7 + $0xb4] sm:$0xf0]  ;;  %v851_v16 = vld [vmem:[#allocation7 + $0x80] sm:$0xf0] }
  0x1b   :  { %482 = vmatpush.bf16.msra.mxu3 %v822_v7  ;;  %v810_v13 = vor.u32 %v878_v9, %v809_v8  ;;  %v730_v14 = vor.u32 %v856_v10, %v727_v12  ;;  %v701_v15 = vld [vmem:[#allocation7 + $0x78] sm:$0xf]  ;;  %v853_v17 = vld [vmem:[#allocation7 + $0x94] sm:$0xf]  ;;  %v875_v19 = vld [vmem:[#allocation8 + $0x80] sm:$0xf0] }
  0x1c   :  { %v797_v18 = vld [vmem:[#allocation8 + $0x78] sm:$0xf]  ;;  %v715_v20 = vld [vmem:[#allocation7 + $0x9c] sm:$0xf0]  ;;  %v702_v22 = vor.u32 %v851_v16, %v701_v15  ;;  %v850_v23 = vld [vmem:[#allocation7 + $0x7c] sm:$0xf] }
  0x1d   :  { %285 = vmatpush.bf16.msra.mxu1 %v730_v14  ;;  %v718_v21 = vor.u32 %v853_v17, %v715_v20  ;;  %v703_v24 = vld [vmem:[#allocation7 + $0x84] sm:$0xf0]  ;;  %v798_v25 = vor.u32 %v875_v19, %v797_v18  ;;  %v689_v26 = vld [vmem:[#allocation7 + $0x60] sm:$0xf]  ;;  %v848_v27 = vld [vmem:[#allocation7 + $0x68] sm:$0xf0] }
  0x1e   :  { %272 = vmatpush.bf16.msra.mxu0 %v714_v11  ;;  %v785_v28 = vld [vmem:[#allocation8 + $0x60] sm:$0xf]  ;;  %v872_v29 = vld [vmem:[#allocation8 + $0x68] sm:$0xf0]  ;;  %v706_v30 = vor.u32 %v850_v23, %v703_v24  ;;  %v690_v31 = vor.u32 %v848_v27, %v689_v26  ;;  %v847_v32 = vld [vmem:[#allocation7 + $0x64] sm:$0xf] }
  0x1f   :  { %483 = vmatpush.bf16.msra.mxu3 %v810_v13  ;;  %v691_v33 = vld [vmem:[#allocation7 + $0x6c] sm:$0xf0]  ;;  %v786_v34 = vor.u32 %v872_v29, %v785_v28  ;;  %v677_v35 = vld [vmem:[#allocation7 + $0x48] sm:$0xf]  ;;  %v845_v36 = vld [vmem:[#allocation7 + $0x50] sm:$0xf0] }
  0x20   :  { %v773_v37 = vld [vmem:[#allocation8 + $0x48] sm:$0xf]  ;;  %v869_v38 = vld [vmem:[#allocation8 + $0x50] sm:$0xf0]  ;;  %v694_v39 = vor.u32 %v847_v32, %v691_v33  ;;  %v678_v40 = vor.u32 %v845_v36, %v677_v35  ;;  %v844_v41 = vld [vmem:[#allocation7 + $0x4c] sm:$0xf] }
  0x21   :  { %286 = vmatpush.bf16.msra.mxu1 %v718_v21  ;;  %v679_v42 = vld [vmem:[#allocation7 + $0x54] sm:$0xf0]  ;;  %v774_v43 = vor.u32 %v869_v38, %v773_v37  ;;  %v665_v44 = vld [vmem:[#allocation7 + $0x30] sm:$0xf]  ;;  %v842_v45 = vld [vmem:[#allocation7 + $0x38] sm:$0xf0] }
  0x22   :  { %273 = vmatpush.bf16.msra.mxu0 %v702_v22  ;;  %v733_v46 = vld [vmem:[#allocation7 + $0xb0] sm:$0xf]  ;;  %v866_v48 = vld [vmem:[#allocation8 + $0x38] sm:$0xf0]  ;;  %v682_v50 = vor.u32 %v844_v41, %v679_v42  ;;  %v841_v51 = vld [vmem:[#allocation7 + $0x34] sm:$0xf]  ;;  %v666_v53 = vor.u32 %v842_v45, %v665_v44 }
  0x23   :  { %484 = vmatpush.bf16.msra.mxu3 %v798_v25  ;;  %v761_v47 = vld [vmem:[#allocation8 + $0x30] sm:$0xf]  ;;  %v858_v49 = vld [vmem:[#allocation7 + $0xb8] sm:$0xf0]  ;;  %v667_v54 = vld [vmem:[#allocation7 + $0x3c] sm:$0xf0] }
  0x24   :  { %v734_v52 = vor.u32 %v858_v49, %v733_v46  ;;  %v721_v55 = vld [vmem:[#allocation7 + $0x98] sm:$0xf]  ;;  %v855_v56 = vld [vmem:[#allocation7 + $0xa0] sm:$0xf0]  ;;  %v762_v57 = vor.u32 %v866_v48, %v761_v47  ;;  %v709_v63 = vld [vmem:[#allocation7 + $0x80] sm:$0xf]  ;;  %v670_v1 = vor.u32 %v841_v51, %v667_v54 }
  0x25   :  { %287 = vmatpush.bf16.msra.mxu1 %v706_v30  ;;  %v653_v58 = vld [vmem:[#allocation7 + $0x18] sm:$0xf]  ;;  %v839_v59 = vld [vmem:[#allocation7 + $0x20] sm:$0xf0]  ;;  %v722_v61 = vor.u32 %v855_v56, %v721_v55  ;;  %v852_v0 = vld [vmem:[#allocation7 + $0x88] sm:$0xf0] }
  0x26   :  { %274 = vmatpush.bf16.msra.mxu0 %v690_v31  ;;  %v749_v60 = vld [vmem:[#allocation8 + $0x18] sm:$0xf]  ;;  %299 = vmatpush.bf16.msra.mxu2 %v734_v52  ;;  %v863_v62 = vld [vmem:[#allocation8 + $0x20] sm:$0xf0]  ;;  %v654_v2 = vor.u32 %v839_v59, %v653_v58  ;;  %v838_v3 = vld [vmem:[#allocation7 + $0x1c] sm:$0xf]  ;;  %v710_v9 = vor.u32 %v852_v0, %v709_v63 }
  0x27   :  { %485 = vmatpush.bf16.msra.mxu3 %v786_v34  ;;  %v655_v4 = vld [vmem:[#allocation7 + $0x24] sm:$0xf0]  ;;  %v750_v5 = vor.u32 %v863_v62, %v749_v60  ;;  %v641_v6 = vld [vmem:[#allocation7] sm:$0xf]  ;;  %v836_v7 = vld [vmem:[#allocation7 + $0x8] sm:$0xf0] }
  0x28   :  { %v737_v8 = vld [vmem:[#allocation8] sm:$0xf]  ;;  %v860_v10 = vld [vmem:[#allocation8 + $0x8] sm:$0xf0]  ;;  %v823_v12 = vld [vmem:[#allocation8 + $0xb4] sm:$0xf0]  ;;  %v658_v13 = vor.u32 %v838_v3, %v655_v4  ;;  %v642_v18 = vor.u32 %v836_v7, %v641_v6 }
  0x29   :  { %288 = vmatpush.bf16.msra.mxu1 %v694_v39  ;;  %v880_v11 = vld [vmem:[#allocation8 + $0xac] sm:$0xf]  ;;  %v1126_v14 = vld [vmem:[#allocation5] sm:$0xff]  ;;  %v835_v15 = vld [vmem:[#allocation7 + $0x4] sm:$0xf]  ;;  %v738_v22 = vor.u32 %v860_v10, %v737_v8  ;;  %s1074_s2 = smov [#allocation11]  }
  0x2a   :  { %275 = vmatpush.bf16.msra.mxu0 %v678_v40  ;;  %300 = vmatpush.bf16.msra.mxu2 %v722_v61  ;;  %v697_v16 = vld [vmem:[#allocation7 + $0x68] sm:$0xf]  ;;  %v849_v17 = vld [vmem:[#allocation7 + $0x70] sm:$0xf0]  ;;  %v643_v19 = vld [vmem:[#allocation7 + $0xc] sm:$0xf0]  ;;  %v826_v23 = vor.u32 %v880_v11, %v823_v12 }
  0x2b   :  { %486 = vmatpush.bf16.msra.mxu3 %v774_v43  ;;  %v97_v20 = vld [vmem:[#allocation2] sm:$0xff]  ;;  %v98_v21 = vld [vmem:[#allocation2 + $0x8] sm:$0xff]  ;;  %v1128_v24 = vld [vmem:[#allocation5 + $0x8] sm:$0xff]  ;;  %v698_v29 = vor.u32 %v849_v17, %v697_v16  ;;  %v646_v30 = vor.u32 %v835_v15, %v643_v19  ;;  %s622_s4 = sshll.u32 %s1074_s2, 4  ;;  %s624_s21 = sshll.u32 %s1165_s5, 4  ;;  %s623_s4 = int_to_ptr.vmem [resolvable:$true] %s622_s4  ;;  %s625_s21 = int_to_ptr.hbm [resolvable:$true] %s624_s21 }
  0x2c   :  { %v829_v25 = vld [vmem:[#allocation8 + $0xb0] sm:$0xf]  ;;  %v882_v26 = vld [vmem:[#allocation8 + $0xb8] sm:$0xf0]  ;;  %v877_v27 = vld [vmem:[#allocation8 + $0x94] sm:$0xf]  ;;  %v1130_v31 = vpack.c.bf16 %v98_v21, %v97_v20  ;;  %v1134_v34 = vpack.c.bf16 %v1128_v24, %v1126_v14 }
  0x2d   :  { %289 = vmatpush.bf16.msra.mxu1 %v682_v50  ;;  %v811_v28 = vld [vmem:[#allocation8 + $0x9c] sm:$0xf0]  ;;  %v685_v32 = vld [vmem:[#allocation7 + $0x50] sm:$0xf]  ;;  %v846_v33 = vld [vmem:[#allocation7 + $0x58] sm:$0xf0]  ;;  %v830_v35 = vor.u32 %v882_v26, %v829_v25 }
  0x2e   :  { %276 = vmatpush.bf16.msra.mxu0 %v666_v53  ;;  %301 = vmatpush.bf16.msra.mxu2 %v710_v9  ;;  %v814_v36 = vor.u32 %v877_v27, %v811_v28  ;;  %v817_v37 = vld [vmem:[#allocation8 + $0x98] sm:$0xf]  ;;  %v879_v38 = vld [vmem:[#allocation8 + $0xa0] sm:$0xf0]  ;;  %v874_v39 = vld [vmem:[#allocation8 + $0x7c] sm:$0xf]  ;;  %v686_v41 = vor.u32 %v846_v33, %v685_v32 }
  0x2f   :  { %487 = vmatpush.bf16.msra.mxu3 %v762_v57  ;;  %v799_v40 = vld [vmem:[#allocation8 + $0x84] sm:$0xf0]  ;;  %v673_v42 = vld [vmem:[#allocation7 + $0x38] sm:$0xf]  ;;  %v843_v43 = vld [vmem:[#allocation7 + $0x40] sm:$0xf0]  ;;  %v818_v44 = vor.u32 %v879_v38, %v817_v37 }
  0x30   :  { %v802_v45 = vor.u32 %v874_v39, %v799_v40  ;;  %v805_v46 = vld [vmem:[#allocation8 + $0x80] sm:$0xf]  ;;  %v876_v47 = vld [vmem:[#allocation8 + $0x88] sm:$0xf0]  ;;  %v871_v48 = vld [vmem:[#allocation8 + $0x64] sm:$0xf]  ;;  %v674_v50 = vor.u32 %v843_v43, %v673_v42 }
  0x31   :  { %290 = vmatpush.bf16.msra.mxu1 %v670_v1  ;;  %v787_v49 = vld [vmem:[#allocation8 + $0x6c] sm:$0xf0]  ;;  %v661_v51 = vld [vmem:[#allocation7 + $0x20] sm:$0xf]  ;;  %v840_v52 = vld [vmem:[#allocation7 + $0x28] sm:$0xf0]  ;;  %v806_v53 = vor.u32 %v876_v47, %v805_v46 }
  0x32   :  { %277 = vmatpush.bf16.msra.mxu0 %v654_v2  ;;  %302 = vmatpush.bf16.msra.mxu2 %v698_v29  ;;  %v790_v54 = vor.u32 %v871_v48, %v787_v49  ;;  %v793_v55 = vld [vmem:[#allocation8 + $0x68] sm:$0xf]  ;;  %v873_v56 = vld [vmem:[#allocation8 + $0x70] sm:$0xf0]  ;;  %v868_v57 = vld [vmem:[#allocation8 + $0x4c] sm:$0xf]  ;;  %v662_v59 = vor.u32 %v840_v52, %v661_v51 }
  0x33   :  { %488 = vmatpush.bf16.msra.mxu3 %v750_v5  ;;  %v775_v58 = vld [vmem:[#allocation8 + $0x54] sm:$0xf0]  ;;  %v649_v60 = vld [vmem:[#allocation7 + $0x8] sm:$0xf]  ;;  %v837_v61 = vld [vmem:[#allocation7 + $0x10] sm:$0xf0]  ;;  %v794_v62 = vor.u32 %v873_v56, %v793_v55 }
  0x34   :  { %v778_v63 = vor.u32 %v868_v57, %v775_v58  ;;  %v781_v0 = vld [vmem:[#allocation8 + $0x50] sm:$0xf]  ;;  %v870_v1 = vld [vmem:[#allocation8 + $0x58] sm:$0xf0]  ;;  %v865_v2 = vld [vmem:[#allocation8 + $0x34] sm:$0xf]  ;;  %v650_v4 = vor.u32 %v837_v61, %v649_v60 }
  0x35   :  { %291 = vmatpush.bf16.msra.mxu1 %v658_v13  ;;  %v763_v3 = vld [vmem:[#allocation8 + $0x3c] sm:$0xf0]  ;;  %v782_v5 = vor.u32 %v870_v1, %v781_v0  ;;  %v769_v7 = vld [vmem:[#allocation8 + $0x38] sm:$0xf]  ;;  %v867_v8 = vld [vmem:[#allocation8 + $0x40] sm:$0xf0] }
  0x36   :  { %278 = vmatpush.bf16.msra.mxu0 %v642_v18  ;;  %303 = vmatpush.bf16.msra.mxu2 %v686_v41  ;;  %v766_v6 = vor.u32 %v865_v2, %v763_v3  ;;  %v862_v9 = vld [vmem:[#allocation8 + $0x1c] sm:$0xf]  ;;  %v751_v10 = vld [vmem:[#allocation8 + $0x24] sm:$0xf0]  ;;  %v770_v11 = vor.u32 %v867_v8, %v769_v7  ;;  %v757_v13 = vld [vmem:[#allocation8 + $0x20] sm:$0xf] }
  0x37   :  { %489 = vmatpush.bf16.msra.mxu3 %v738_v22  ;;  %v754_v12 = vor.u32 %v862_v9, %v751_v10  ;;  %v864_v15 = vld [vmem:[#allocation8 + $0x28] sm:$0xf0]  ;;  %v859_v16 = vld [vmem:[#allocation8 + $0x4] sm:$0xf]  ;;  %v739_v17 = vld [vmem:[#allocation8 + $0xc] sm:$0xf0] }
  0x38   :  { %v758_v18 = vor.u32 %v864_v15, %v757_v13  ;;  %v742_v19 = vor.u32 %v859_v16, %v739_v17  ;;  %v745_v20 = vld [vmem:[#allocation8 + $0x8] sm:$0xf]  ;;  %v861_v21 = vld [vmem:[#allocation8 + $0x10] sm:$0xf0] }
  0x39   :  { %292 = vmatpush.bf16.msra.mxu1 %v646_v30  ;;  %279 = vmatmul.bf16.vlgmr.msra.gmra.mxu0 %v1130_v31  ;;  %v746_v22 = vor.u32 %v861_v21, %v745_v20  ;;  %v1144_v26 = vld [vmem:[#allocation10 + $0x1] ss:$2 sm:$0x7] }
  0x3a   :  { %496 = vmatpush.bf16.msrb.mxu0 %v826_v23  ;;  %490 = vmatmul.bf16.vlgmr.msra.gmra.mxu3 %v1134_v34  ;;  %v1142_v23 = vld [vmem:[#allocation10] ss:$2 sm:$0x7]  ;;  %v348_v28 = vperm.slane %v1144_v26, 0 }
  0x3b   :  { %304 = vmatpush.bf16.msra.mxu2 %v674_v50  ;;  %v137_v27 = vperm.slane %v1142_v23, 0  ;;  %v138_v43 = vperm.slane %v1142_v23, 1  ;;  %v139_v7 = vperm.slane %v1142_v23, 2 }
  0x3c   :  { %293 = vmatmul.bf16.vlgmr.msra.gmra.mxu1 %v1130_v31 }
  0x3d   :  { %510 = vmatpush.bf16.msrb.mxu1 %v830_v35 }
  0x3e   :  { %497 = vmatpush.bf16.msrb.mxu0 %v814_v36 }
  0x3f   :  { %305 = vmatpush.bf16.msra.mxu2 %v662_v59  ;;  %v350_v59 = vperm.slane %v1144_v26, 2 }
  0x41   :  { %511 = vmatpush.bf16.msrb.mxu1 %v818_v44 }
  0x42   :  { %498 = vmatpush.bf16.msrb.mxu0 %v802_v45  ;;  %v349_v45 = vperm.slane %v1144_v26, 1 }
  0x43   :  { %306 = vmatpush.bf16.msra.mxu2 %v650_v4 }
  0x45   :  { %512 = vmatpush.bf16.msrb.mxu1 %v806_v53 }
  0x46   :  { %499 = vmatpush.bf16.msrb.mxu0 %v790_v54  ;;  %307 = vmatmul.bf16.vlgmr.msra.gmra.mxu2 %v1130_v31 }
  0x49   :  { %513 = vmatpush.bf16.msrb.mxu1 %v794_v62 }
  0x4a   :  { %500 = vmatpush.bf16.msrb.mxu0 %v778_v63 }
  0x4d   :  { %514 = vmatpush.bf16.msrb.mxu1 %v782_v5 }
  0x4e   :  { %501 = vmatpush.bf16.msrb.mxu0 %v766_v6 }
  0x51   :  { %515 = vmatpush.bf16.msrb.mxu1 %v770_v11 }
  0x52   :  { %502 = vmatpush.bf16.msrb.mxu0 %v754_v12 }
  0x55   :  { %516 = vmatpush.bf16.msrb.mxu1 %v758_v18 }
  0x56   :  { %503 = vmatpush.bf16.msrb.mxu0 %v742_v19 }
  0x59   :  { %504 = vmatmul.bf16.vlgmr.msrb.gmra.mxu0 %v1134_v34  ;;  %517 = vmatpush.bf16.msrb.mxu1 %v746_v22 }
  0x5c   :  { %518 = vmatmul.bf16.vlgmr.msrb.gmra.mxu1 %v1134_v34 }
  0xb6   :  { %v280_v25 = vpop.f32.mrf.mxu0 }
  0xb7   :  { %v281_v29 = vadd.f32 %v280_v25, %v137_v27 }
  0xb9   :  { %v294_v37 = vpop.f32.mrf.mxu1 }
  0xba   :  { %v295_v47 = vadd.f32 %v294_v37, %v138_v43 }
  0xbd   :  { %v491_v30 = vpop.f32.mrf.mxu3 }
  0xbe   :  { %v492_v31 = vadd.f32 %v491_v30, %v348_v28  ;;  %v282_v33 = vpop.f32.mrf.mxu0 }
  0xbf   :  { %v283_v36 = vadd.f32 %v282_v33, %v137_v27 }
  0xc0   :  { %v524_v32 = vadd.f32 %v492_v31, %v281_v29 }
  0xc1   :  { %v296_v44 = vpop.f32.mrf.mxu1 }
  0xc2   :  { %v831_v35 = vmul.f32 -1.442695, %v524_v32  ;;  %v297_v63 = vadd.f32 %v296_v44, %v138_v43 }
  0xc4   :  { %893 = vpow2.f32 %v831_v35 }
  0xc5   :  { %v493_v38 = vpop.f32.mrf.mxu3 }
  0xc6   :  { %v494_v34 = vadd.f32 %v493_v38, %v348_v28 }
  0xc8   :  { %v525_v39 = vadd.f32 %v494_v34, %v283_v36 }
  0xc9   :  { %v308_v4 = vpop.f32.mrf.mxu2 }
  0xca   :  { %v894_v40 = vpop.eup %893  ;;  %v832_v41 = vmul.f32 -1.442695, %v525_v39  ;;  %v309_v18 = vadd.f32 %v308_v4, %v139_v7 }
  0xcb   :  { %v532_v42 = vadd.f32 1.0, %v894_v40 }
  0xcc   :  { %895 = vpow2.f32 %v832_v41 }
  0xcd   :  { %897 = vrcp.f32 %v532_v42  ;;  %vm539_vm0 = vweird.f32 %v532_v42  ;;  %v545_v58 = vand.u32 2147483648, %v532_v42  ;;  %v543_v60 = vand.u32 2147483647, %v532_v42 }
  0xcf   :  { %v546_v2 = vor.u32 1.1754944e-38, %v545_v58  ;;  %vm544_vm3 = vcmp.eq.f32.partialorder %v543_v60, 8.507059e+37 }
  0xd1   :  { %v310_v28 = vpop.f32.mrf.mxu2 }
  0xd2   :  { %v896_v46 = vpop.eup %895  ;;  %v311_v33 = vadd.f32 %v310_v28, %v139_v7 }
  0xd3   :  { %v898_v48 = vpop.eup %897  ;;  %v533_v49 = vadd.f32 1.0, %v896_v46 }
  0xd4   :  { %v535_v52 = vmul.f32 %v898_v48, %v532_v42  ;;  %vm540_vm1 = vweird.f32 %v898_v48 }
  0xd5   :  { %899 = vrcp.f32 %v533_v49  ;;  %vm541_vm2 = vmor %vm539_vm0, %vm540_vm1  ;;  %v560_v15 = vand.u32 2147483648, %v533_v49  ;;  %v558_v19 = vand.u32 2147483647, %v533_v49  ;;  %vm554_vm5 = vweird.f32 %v533_v49 }
  0xd6   :  { %v505_v50 = vpop.f32.mrf.mxu0  ;;  %v536_v54 = vsub.f32 1.0, %v535_v52 }
  0xd7   :  { %v506_v51 = vadd.f32 %v505_v50, %v349_v45  ;;  %v561_v23 = vor.u32 1.1754944e-38, %v560_v15  ;;  %vm559_vm7 = vcmp.eq.f32.partialorder %v558_v19, 8.507059e+37 }
  0xd8   :  { %v537_v57 = vmul.f32 %v898_v48, %v536_v54 }
  0xd9   :  { %v564_v53 = vadd.f32 %v506_v51, %v295_v47  ;;  %v519_v56 = vpop.f32.mrf.mxu1 }
  0xda   :  { %v538_v61 = vadd.f32 %v898_v48, %v537_v57  ;;  %v520_v6 = vadd.f32 %v519_v56, %v350_v59 }
  0xdb   :  { %v833_v55 = vmul.f32 -1.442695, %v564_v53  ;;  %v900_v62 = vpop.eup %899 }
  0xdc   :  { %v542_v1 = vsel %vm541_vm2, %v898_v48, %v538_v61  ;;  %v550_v5 = vmul.f32 %v900_v62, %v533_v49  ;;  %vm555_vm4 = vweird.f32 %v900_v62 }
  0xdd   :  { %901 = vpow2.f32 %v833_v55  ;;  %v547_v8 = vsel %vm544_vm3, %v546_v2, %v542_v1  ;;  %vm556_vm6 = vmor %vm554_vm5, %vm555_vm4 }
  0xde   :  { %v507_v0 = vpop.f32.mrf.mxu0  ;;  %v551_v10 = vsub.f32 1.0, %v550_v5  ;;  %v604_v17 = vmul.f32 %v547_v8, %v520_v6 }
  0xdf   :  { %v508_v3 = vadd.f32 %v507_v0, %v349_v45 }
  0xe0   :  { %v552_v13 = vmul.f32 %v900_v62, %v551_v10  ;;  %v606_v25 = vadd.f32 %v604_v17, %v309_v18 }
  0xe1   :  { %v565_v9 = vadd.f32 %v508_v3, %v297_v63  ;;  %v521_v20 = vpop.f32.mrf.mxu1 }
  0xe2   :  { %v553_v21 = vadd.f32 %v900_v62, %v552_v13  ;;  %v522_v26 = vadd.f32 %v521_v20, %v350_v59 }
  0xe3   :  { %v902_v11 = vpop.eup %901  ;;  %v834_v12 = vmul.f32 -1.442695, %v565_v9 }
  0xe4   :  { %v572_v16 = vadd.f32 1.0, %v902_v11  ;;  %v557_v22 = vsel %vm556_vm6, %v900_v62, %v553_v21 }
  0xe5   :  { %903 = vpow2.f32 %v834_v12  ;;  %v562_v27 = vsel %vm559_vm7, %v561_v23, %v557_v22 }
  0xe6   :  { %905 = vrcp.f32 %v572_v16  ;;  %v605_v32 = vmul.f32 %v562_v27, %v522_v26  ;;  %v585_v38 = vand.u32 2147483648, %v572_v16  ;;  %v583_v39 = vand.u32 2147483647, %v572_v16 }
  0xe7   :  { %907 = vtanh.f32 %v606_v25  ;;  %vm579_vm9 = vweird.f32 %v572_v16 }
  0xe8   :  { %v607_v37 = vadd.f32 %v605_v32, %v311_v33  ;;  %v586_v43 = vor.u32 1.1754944e-38, %v585_v38  ;;  %vm584_vm11 = vcmp.eq.f32.partialorder %v583_v39, 8.507059e+37 }
  0xeb   :  { %v904_v29 = vpop.eup %903 }
  0xec   :  { %v906_v30 = vpop.eup %905  ;;  %v573_v31 = vadd.f32 1.0, %v904_v29 }
  0xed   :  { %v575_v35 = vmul.f32 %v906_v30, %v572_v16  ;;  %vm580_vm8 = vweird.f32 %v906_v30  ;;  %v908_v40 = vpop.eup %907 }
  0xee   :  { %909 = vrcp.f32 %v573_v31  ;;  %vm581_vm10 = vmor %vm579_vm9, %vm580_vm8  ;;  %v610_v45 = vsub.f32 %v1126_v14, %v908_v40  ;;  %v600_v50 = vand.u32 2147483648, %v573_v31  ;;  %v598_v52 = vand.u32 2147483647, %v573_v31 }
  0xef   :  { %v576_v36 = vsub.f32 1.0, %v575_v35  ;;  %911 = vtanh.f32 %v607_v37  ;;  %vm594_vm13 = vweird.f32 %v573_v31 }
  0xf0   :  { %v601_v56 = vor.u32 1.1754944e-38, %v600_v50  ;;  %vm599_vm15 = vcmp.eq.f32.partialorder %v598_v52, 8.507059e+37 }
  0xf1   :  { %v577_v34 = vmul.f32 %v906_v30, %v576_v36 }
  0xf3   :  { %v578_v41 = vadd.f32 %v906_v30, %v577_v34 }
  0xf4   :  { %v910_v42 = vpop.eup %909 }
  0xf5   :  { %v590_v44 = vmul.f32 %v910_v42, %v573_v31  ;;  %v582_v46 = vsel %vm581_vm10, %v906_v30, %v578_v41  ;;  %vm595_vm12 = vweird.f32 %v910_v42  ;;  %v912_v54 = vpop.eup %911 }
  0xf6   :  { %v587_v47 = vsel %vm584_vm11, %v586_v43, %v582_v46  ;;  %vm596_vm14 = vmor %vm594_vm13, %vm595_vm12  ;;  %v611_v57 = vsub.f32 %v1128_v24, %v912_v54 }
  0xf7   :  { %v591_v48 = vsub.f32 1.0, %v590_v44  ;;  %v612_v49 = vmul.f32 %v610_v45, %v587_v47 }
  0xf9   :  { %v592_v51 = vmul.f32 %v910_v42, %v591_v48  ;;  %v614_v53 = vadd.f32 %v908_v40, %v612_v49 }
  0xfb   :  { %v593_v55 = vadd.f32 %v910_v42, %v592_v51  ;;  %616 = vst [vmem:[#allocation11] sm:$0xff] %v614_v53 }
  0xfd   :  { %v597_v58 = vsel %vm596_vm14, %v910_v42, %v593_v55 }
  0xfe   :  { %v602_v14 = vsel %vm599_vm15, %v601_v56, %v597_v58 }
  0xff   :  { %v613_v59 = vmul.f32 %v611_v57, %v602_v14 }
 0x101   :  { %v615_v60 = vadd.f32 %v912_v54, %v613_v59 }
 0x103   :  { %617 = vst [vmem:[#allocation11 + $0x8] sm:$0xff] %v615_v60 }
 0x104   :  { %630 = dma.vmem_to_hbm [thread:$0]  %s623_s4, 256, %s625_s21, [#allocation4], %s1066_s23, %s1066_s23, %s1067_s24  }
 0x105   :  { %1063 = dma.done.wait [#allocation4], 256  }
 0x106   :  { %1064 = vsyncadd [#allocation4], 4294967040 }
 0x107   :  { %635 = vsyncpa [#allocation3], 1 }
 0x108   :  { %636 = vsyncpa [#allocation6], 1 }
 0x109   :  { %637 = vsyncpa [#allocation9], 1 }
 0x10a   :  { %638 = vsyncpa [#allocation4], 1 }

</bundles_post_ra>
